<compile_context>
chip_gen: v7x
topology: tpu7x:2x2x1
jax: 0.10.0
libtpu: 0.0.40
codegen_flags: <defaults>
</compile_context>

<pallas_src>
import functools

import jax
import jax.numpy as jnp
from jax.experimental import pallas as pl
from jax.experimental.pallas import tpu as pltpu


def _round_up(x, m):
    return (x + m - 1) // m * m


# ---------------------------------------------------------------------------
# Fused kernel
#   inputs : x0 (TN, F0), flat_l (TN, seg_l) for l=1..L,
#            W_0 (F0, D_exp) bf16, W_l (seg_l, D_exp) bf16, b (1, D_exp) f32
#   output : slab (TN, D_exp)   [SiLU head | gated_1 | ... | gated_L], each
#            segment starting at a multiple of 128 lanes.
# ---------------------------------------------------------------------------
def _fused_gate_kernel(d0_pad, seg_sizes, seg_offsets, *refs):
    L = len(seg_sizes)
    x0_ref = refs[0]
    flat_refs = refs[1:1 + L]
    w_refs = refs[1 + L:2 + 2 * L]
    b_ref = refs[2 + 2 * L]
    out_ref = refs[3 + 2 * L]

    dot_dtype = w_refs[0].dtype

    # All linear heads accumulated in f32 on the MXU.  The per-channel
    # squared-norm reduction is folded into the matmul (weight rows repeated
    # 3**l times) and the gate broadcast is folded in too (gate weight columns
    # repeated 3**l times, each segment padded to a 128-lane boundary).
    y = jnp.dot(x0_ref[...].astype(dot_dtype), w_refs[0][...],
                preferred_element_type=jnp.float32)
    flats = []
    for i in range(L):
        f = flat_refs[i][...].astype(jnp.float32)
        flats.append(f)
        # (flat**2) @ W_rowrep == per-channel-norm @ W  (square in f32, dot in bf16)
        y = y + jnp.dot((f * f).astype(dot_dtype), w_refs[i + 1][...],
                        preferred_element_type=jnp.float32)
    y = y + b_ref[...].astype(jnp.float32)

    # One EUP sigmoid pass over the whole lane-dense slab (the redundant,
    # column-expanded gate sigmoids are free filler; kernel is HBM bound).
    s = jax.nn.sigmoid(y)

    # SiLU head: first d0_pad columns (vreg-aligned, full-width store).
    out_ref[:, :d0_pad] = (y[:, :d0_pad] * s[:, :d0_pad]).astype(out_ref.dtype)

    # Gated tensor heads: each segment starts at a multiple of 128 lanes, so
    # the slice of `s` is lane-0 aligned (no cross-lane relayout) and the gate
    # multiply is a dense VPU op.
    for i in range(L):
        off = seg_offsets[i]
        w = seg_sizes[i]
        out_ref[:, off:off + w] = (flats[i] * s[:, off:off + w]).astype(out_ref.dtype)
    # Columns in the 128-lane padding gaps of the slab are never read back by
    # the wrapper; they are intentionally left untouched.


def tensor_activation_gate_fwd(x0, flats, w_parts, b_exp, d0_pad, seg_sizes,
                               seg_offsets, *, tn_max=2048,
                               vmem_io_budget=16 * 1024 * 1024):
    N, F0 = x0.shape
    D_exp = b_exp.shape[1]
    seg_sizes = tuple(int(s) for s in seg_sizes)
    seg_offsets = tuple(int(o) for o in seg_offsets)
    out_dtype = x0.dtype

    # --- batch tile --------------------------------------------------------
    # The kernel moves ~1-2 KB/row and does tiny matmuls, so it is HBM/step-
    # overhead bound: use the largest tile (multiple of 8) that (a) stays
    # under a conservative double-buffered VMEM I/O budget (keeps v7x's 64 MiB
    # VMEM safe) and (b) still leaves >= 2 grid steps so both v7x TensorCores
    # get work with dimension_semantics=("parallel",).
    in_row_bytes = (F0 + sum(seg_sizes)) * x0.dtype.itemsize
    out_row_bytes = D_exp * out_dtype.itemsize
    row_bytes = 2 * (in_row_bytes + out_row_bytes) + 2 * D_exp * 4  # + y,s temps
    tn_cap = max(8, (vmem_io_budget // row_bytes) // 8 * 8)
    N8 = _round_up(max(N, 1), 8)
    TN = max(8, min(tn_max, N8, tn_cap))
    if N8 >= 16 and pl.cdiv(N, TN) < 2:
        TN = _round_up(pl.cdiv(N8, 2), 8)
    grid = (pl.cdiv(N, TN),)  # partial last block handled by Pallas: no jnp.pad / o[:N]

    def row_spec(width):
        return pl.BlockSpec((TN, width), lambda i: (i, 0))

    def resident_spec(shape):  # weights/bias stay resident across the grid
        return pl.BlockSpec(shape, lambda i: (0, 0))

    in_specs = ([row_spec(F0)]
                + [row_spec(s) for s in seg_sizes]
                + [resident_spec(w.shape) for w in w_parts]
                + [resident_spec(b_exp.shape)])
    out_specs = pl.BlockSpec((TN, D_exp), lambda i: (i, 0))
    out_shape = jax.ShapeDtypeStruct((N, D_exp), out_dtype)

    k_total = F0 + sum(seg_sizes)
    cost = pl.CostEstimate(
        flops=int(2 * N * k_total * D_exp),
        transcendentals=int(N * D_exp),
        bytes_accessed=int(N * (in_row_bytes + out_row_bytes)
                           + sum(int(w.size) * w.dtype.itemsize for w in w_parts)
                           + int(b_exp.size) * b_exp.dtype.itemsize))

    return pl.pallas_call(
        functools.partial(_fused_gate_kernel, int(d0_pad), seg_sizes, seg_offsets),
        grid=grid,
        in_specs=in_specs,
        out_specs=out_specs,
        out_shape=out_shape,
        compiler_params=pltpu.CompilerParams(
            dimension_semantics=("parallel",),
            vmem_limit_bytes=32 * 1024 * 1024),
        cost_estimate=cost,
    )(x0, *flats, *w_parts, b_exp)


# ---------------------------------------------------------------------------
# Module wrapper: parameter setup + one-time weight expansion in plain JAX.
# ---------------------------------------------------------------------------
class TensorActivationGatePallas:
    def __init__(self, l_out_list, in_feat0, key, dot_dtype=jnp.bfloat16):
        self.l_out_list = list(l_out_list)
        self.lomax = len(self.l_out_list) - 1
        self.d0 = int(self.l_out_list[0])
        self.channels = [int(c) for c in self.l_out_list[1:]]          # C_l
        self.mults = [3 ** l for l in range(1, self.lomax + 1)]         # 3**l
        self.seg_sizes = tuple(c * m for c, m in zip(self.channels, self.mults))
        self.dot_dtype = dot_dtype

        self.in_feat0 = int(in_feat0)
        self.F = self.in_feat0 + sum(self.channels)
        D_total = sum(self.l_out_list)

        kw, kb = jax.random.split(key)
        scale = 1.0 / jnp.sqrt(jnp.float32(self.F))
        # Reference (unexpanded) parameters: [net0 | gate_1 | ... | gate_L].
        self.W = jax.random.normal(kw, (self.F, D_total), jnp.float32) * scale
        self.b = jax.random.normal(kb, (1, D_total), jnp.float32) * 0.1

        # --- column expansion + 128-lane padding of every head segment ------
        self.d0_pad = _round_up(self.d0, 128)
        self.seg_pads = tuple(_round_up(s, 128) for s in self.seg_sizes)
        offs, off = [], self.d0_pad
        for p in self.seg_pads:
            offs.append(off)
            off += p
        self.seg_offsets = tuple(offs)
        self.D_exp = off

        def pad_cols(a, width):
            return jnp.pad(a, ((0, 0), (0, width - a.shape[1])))

        w_cols = [pad_cols(self.W[:, :self.d0], self.d0_pad)]
        b_cols = [pad_cols(self.b[:, :self.d0], self.d0_pad)]
        coff = self.d0
        for c, m, sp in zip(self.channels, self.mults, self.seg_pads):
            w_cols.append(pad_cols(jnp.repeat(self.W[:, coff:coff + c], m, axis=1), sp))
            b_cols.append(pad_cols(jnp.repeat(self.b[:, coff:coff + c], m, axis=1), sp))
            coff += c
        W_colexp = jnp.concatenate(w_cols, axis=1)        # (F, D_exp), f32
        self.b_exp = jnp.concatenate(b_cols, axis=1)      # (1, D_exp), f32

        # --- row split per input part + 3**l row repetition (norm folding) --
        parts = [W_colexp[:self.in_feat0, :]]
        roff = self.in_feat0
        for c, m in zip(self.channels, self.mults):
            parts.append(jnp.repeat(W_colexp[roff:roff + c, :], m, axis=0))
            roff += c
        self.W_parts = [p.astype(self.dot_dtype) for p in parts]  # bf16 MXU operands

    def __call__(self, input_tensors):
        x0 = input_tensors[0]
        N = x0.shape[0]
        flats = [input_tensors[l].reshape(N, -1)            # (N, C_l*3**l) lane-packed
                 for l in range(1, self.lomax + 1)]
        slab = tensor_activation_gate_fwd(
            x0, flats, self.W_parts, self.b_exp,
            self.d0_pad, self.seg_sizes, self.seg_offsets)
        outputs = {0: slab[:, :self.d0]}
        for i, l in enumerate(range(1, self.lomax + 1)):
            off = self.seg_offsets[i]
            outputs[l] = slab[:, off:off + self.seg_sizes[i]].reshape(
                input_tensors[l].shape)
        return outputs

    # Exact module semantics (f32 everywhere, unexpanded weights).
    def reference(self, input_tensors):
        feeds = [input_tensors[0]]
        for l in range(1, self.lomax + 1):
            x = input_tensors[l]
            flat = x.reshape(x.shape[0], x.shape[1], -1)
            feeds.append(jnp.sum(flat * flat, axis=2))
        feed = jnp.concatenate(feeds, axis=1)
        y = feed @ self.W + self.b
        y0 = y[:, :self.d0]
        outputs = {0: y0 * jax.nn.sigmoid(y0)}
        off = self.d0
        for l in range(1, self.lomax + 1):
            cl = self.l_out_list[l]
            g = jax.nn.sigmoid(y[:, off:off + cl])
            off += cl
            shape = input_tensors[l].shape
            g_exp = g.reshape(shape[0], shape[1], *([1] * (len(shape) - 2)))
            outputs[l] = input_tensors[l] * g_exp
        return outputs

    # Same arithmetic as the kernel (bf16 dot operands, f32 accumulation) in
    # plain JAX -> tight check of the kernel wiring, independent of bf16 error.
    def reference_emulated(self, input_tensors):
        x0 = input_tensors[0]
        N = x0.shape[0]
        y = jnp.dot(x0.astype(self.dot_dtype), self.W_parts[0],
                    preferred_element_type=jnp.float32)
        flats = []
        for i, l in enumerate(range(1, self.lomax + 1)):
            f = input_tensors[l].reshape(N, -1).astype(jnp.float32)
            flats.append(f)
            y = y + jnp.dot((f * f).astype(self.dot_dtype), self.W_parts[i + 1],
                            preferred_element_type=jnp.float32)
        y = y + self.b_exp
        s = jax.nn.sigmoid(y)
        outputs = {0: y[:, :self.d0] * s[:, :self.d0]}
        for i, l in enumerate(range(1, self.lomax + 1)):
            off = self.seg_offsets[i]
            seg = self.seg_sizes[i]
            outputs[l] = (flats[i] * s[:, off:off + seg]).reshape(
                input_tensors[l].shape)
        return outputs


if __name__ == "__main__":
    key = jax.random.PRNGKey(0)
    k0, k1, k2, kp = jax.random.split(key, 4)

    # l_out_list = [32, 16, 8] -> lomax = 2
    #   input_tensors[0]: (N, 24)       scalar features
    #   input_tensors[1]: (N, 16, 3)    rank-1 tensors
    #   input_tensors[2]: (N, 8, 3, 3)  rank-2 tensors
    # N=20 is not a multiple of the batch tile -> exercises the partial last
    # block path (no jnp.pad / output slicing) and a 2-step grid.
    l_out_list = [32, 16, 8]
    N, C0 = 20, 24
    input_tensors = {
        0: jax.random.normal(k0, (N, C0), jnp.float32),
        1: jax.random.normal(k1, (N, l_out_list[1], 3), jnp.float32),
        2: jax.random.normal(k2, (N, l_out_list[2], 3, 3), jnp.float32),
    }

    module = TensorActivationGatePallas(l_out_list, in_feat0=C0, key=kp)

    out = module(input_tensors)
    out = jax.tree_util.tree_map(jax.block_until_ready, out)

    # Tight wiring check: plain-JAX emulation of the exact kernel arithmetic.
    emu = module.reference_emulated(input_tensors)
    for l in sorted(out.keys()):
        assert out[l].shape == emu[l].shape, (l, out[l].shape, emu[l].shape)
        assert jnp.allclose(out[l], emu[l], atol=2e-3, rtol=2e-3), \
            f"kernel wiring mismatch at l={l}"

    # Semantic check vs. the exact f32 module math; tolerance is governed by
    # the bf16 MXU operands (review-recommended for v5e/v6e/v7x).
    ref = module.reference(input_tensors)
    for l in sorted(out.keys()):
        assert out[l].shape == ref[l].shape, (l, out[l].shape, ref[l].shape)
        assert jnp.allclose(out[l], ref[l], atol=7.5e-2, rtol=7.5e-2), \
            f"semantic mismatch at l={l}"

    print("KERNEL_OK")
</pallas_src>

<mosaic_0001>
module attributes {stable_mosaic.version = 11 : i64} {
  func.func @_fused_gate_kernel(%arg0: i32, %arg1: memref<16x24xf32, #tpu.memory_space<vmem>>, %arg2: memref<16x48xf32, #tpu.memory_space<vmem>>, %arg3: memref<16x72xf32, #tpu.memory_space<vmem>>, %arg4: memref<24x384xbf16, #tpu.memory_space<vmem>>, %arg5: memref<48x384xbf16, #tpu.memory_space<vmem>>, %arg6: memref<72x384xbf16, #tpu.memory_space<vmem>>, %arg7: memref<1x384xf32, #tpu.memory_space<vmem>>, %arg8: memref<16x384xf32, #tpu.memory_space<vmem>>) attributes {dimension_semantics = [#tpu.dimension_semantics<parallel>], iteration_bounds = array<i64: 2>, scalar_prefetch = 0 : i64, scratch_operands = 0 : i64, tpu.core_type = #tpu.core_type<tc>, window_params = [{transform_indices = @transform_0, window_bounds = array<i64: 16, 24>}, {transform_indices = @transform_1, window_bounds = array<i64: 16, 48>}, {transform_indices = @transform_2, window_bounds = array<i64: 16, 72>}, {pipeline_mode = #tpu.pipeline_mode<synchronous>, transform_indices = @transform_3, window_bounds = array<i64: 24, 384>}, {pipeline_mode = #tpu.pipeline_mode<synchronous>, transform_indices = @transform_4, window_bounds = array<i64: 48, 384>}, {pipeline_mode = #tpu.pipeline_mode<synchronous>, transform_indices = @transform_5, window_bounds = array<i64: 72, 384>}, {pipeline_mode = #tpu.pipeline_mode<synchronous>, transform_indices = @transform_6, window_bounds = array<i64: 1, 384>}, {transform_indices = @transform_7, window_bounds = array<i64: 16, 384>}]} {
    %c0 = arith.constant 0 : index
    %c0_0 = arith.constant 0 : index
    %0 = vector.load %arg1[%c0, %c0_0] : memref<16x24xf32, #tpu.memory_space<vmem>>, vector<16x24xf32>
    %1 = arith.truncf %0 : vector<16x24xf32> to vector<16x24xbf16>
    %c0_1 = arith.constant 0 : index
    %c0_2 = arith.constant 0 : index
    %2 = vector.load %arg4[%c0_1, %c0_2] : memref<24x384xbf16, #tpu.memory_space<vmem>>, vector<24x384xbf16>
    %cst = arith.constant dense<0.000000e+00> : vector<16x384xf32>
    %3 = tpu.matmul %1, %2, %cst {dimension_numbers = #tpu.dot_dimension_numbers<[1], [0], [0], [1], [0, 0, 1, 1], [], []>} : vector<16x24xbf16>, vector<24x384xbf16>, vector<16x384xf32> -> vector<16x384xf32>
    %c0_3 = arith.constant 0 : index
    %c0_4 = arith.constant 0 : index
    %4 = vector.load %arg2[%c0_3, %c0_4] : memref<16x48xf32, #tpu.memory_space<vmem>>, vector<16x48xf32>
    %5 = arith.mulf %4, %4 : vector<16x48xf32>
    %6 = arith.truncf %5 : vector<16x48xf32> to vector<16x48xbf16>
    %c0_5 = arith.constant 0 : index
    %c0_6 = arith.constant 0 : index
    %7 = vector.load %arg5[%c0_5, %c0_6] : memref<48x384xbf16, #tpu.memory_space<vmem>>, vector<48x384xbf16>
    %cst_7 = arith.constant dense<0.000000e+00> : vector<16x384xf32>
    %8 = tpu.matmul %6, %7, %cst_7 {dimension_numbers = #tpu.dot_dimension_numbers<[1], [0], [0], [1], [0, 0, 1, 1], [], []>} : vector<16x48xbf16>, vector<48x384xbf16>, vector<16x384xf32> -> vector<16x384xf32>
    %9 = arith.addf %3, %8 : vector<16x384xf32>
    %c0_8 = arith.constant 0 : index
    %c0_9 = arith.constant 0 : index
    %10 = vector.load %arg3[%c0_8, %c0_9] : memref<16x72xf32, #tpu.memory_space<vmem>>, vector<16x72xf32>
    %11 = arith.mulf %10, %10 : vector<16x72xf32>
    %12 = arith.truncf %11 : vector<16x72xf32> to vector<16x72xbf16>
    %c0_10 = arith.constant 0 : index
    %c0_11 = arith.constant 0 : index
    %13 = vector.load %arg6[%c0_10, %c0_11] : memref<72x384xbf16, #tpu.memory_space<vmem>>, vector<72x384xbf16>
    %cst_12 = arith.constant dense<0.000000e+00> : vector<16x384xf32>
    %14 = tpu.matmul %12, %13, %cst_12 {dimension_numbers = #tpu.dot_dimension_numbers<[1], [0], [0], [1], [0, 0, 1, 1], [], []>} : vector<16x72xbf16>, vector<72x384xbf16>, vector<16x384xf32> -> vector<16x384xf32>
    %15 = arith.addf %9, %14 : vector<16x384xf32>
    %c0_13 = arith.constant 0 : index
    %c0_14 = arith.constant 0 : index
    %16 = vector.load %arg7[%c0_13, %c0_14] : memref<1x384xf32, #tpu.memory_space<vmem>>, vector<1x384xf32>
    %17 = vector.broadcast %16 : vector<1x384xf32> to vector<16x384xf32>
    %18 = arith.addf %15, %17 : vector<16x384xf32>
    %19 = arith.negf %18 : vector<16x384xf32>
    %20 = math.exp %19 : vector<16x384xf32>
    %cst_15 = arith.constant 1.000000e+00 : f32
    %21 = vector.broadcast %cst_15 : f32 to vector<16x384xf32>
    %22 = arith.addf %21, %20 : vector<16x384xf32>
    %23 = arith.divf %21, %22 : vector<16x384xf32>
    %24 = vector.extract_strided_slice %18 {offsets = [0, 0], sizes = [16, 128], strides = [1, 1]} : vector<16x384xf32> to vector<16x128xf32>
    %25 = vector.extract_strided_slice %23 {offsets = [0, 0], sizes = [16, 128], strides = [1, 1]} : vector<16x384xf32> to vector<16x128xf32>
    %26 = arith.mulf %24, %25 : vector<16x128xf32>
    %c0_16 = arith.constant 0 : index
    %c0_17 = arith.constant 0 : index
    %27 = vector.load %arg8[%c0_16, %c0_17] : memref<16x384xf32, #tpu.memory_space<vmem>>, vector<16x128xf32>
    tpu.vector_store %arg8[%c0_16, %c0_17], %26 {strides = array<i32>} : memref<16x384xf32, #tpu.memory_space<vmem>>, vector<16x128xf32>,
    %28 = vector.extract_strided_slice %23 {offsets = [0, 128], sizes = [16, 48], strides = [1, 1]} : vector<16x384xf32> to vector<16x48xf32>
    %29 = arith.mulf %4, %28 : vector<16x48xf32>
    %c0_18 = arith.constant 0 : index
    %c128 = arith.constant 128 : index
    %30 = vector.load %arg8[%c0_18, %c128] : memref<16x384xf32, #tpu.memory_space<vmem>>, vector<16x48xf32>
    tpu.vector_store %arg8[%c0_18, %c128], %29 {strides = array<i32>} : memref<16x384xf32, #tpu.memory_space<vmem>>, vector<16x48xf32>,
    %31 = vector.extract_strided_slice %23 {offsets = [0, 256], sizes = [16, 72], strides = [1, 1]} : vector<16x384xf32> to vector<16x72xf32>
    %32 = arith.mulf %10, %31 : vector<16x72xf32>
    %c0_19 = arith.constant 0 : index
    %c256 = arith.constant 256 : index
    %33 = vector.load %arg8[%c0_19, %c256] : memref<16x384xf32, #tpu.memory_space<vmem>>, vector<16x72xf32>
    tpu.vector_store %arg8[%c0_19, %c256], %32 {strides = array<i32>} : memref<16x384xf32, #tpu.memory_space<vmem>>, vector<16x72xf32>,
    return
  }
  func.func @transform_0(%arg0: i32) -> (i32, i32) {
    %c0_i32 = arith.constant 0 : i32
    %c0_i32_0 = arith.constant 0 : i32
    return %arg0, %c0_i32 : i32, i32
  }
  func.func @transform_1(%arg0: i32) -> (i32, i32) {
    %c0_i32 = arith.constant 0 : i32
    %c0_i32_0 = arith.constant 0 : i32
    return %arg0, %c0_i32 : i32, i32
  }
  func.func @transform_2(%arg0: i32) -> (i32, i32) {
    %c0_i32 = arith.constant 0 : i32
    %c0_i32_0 = arith.constant 0 : i32
    return %arg0, %c0_i32 : i32, i32
  }
  func.func @transform_3(%arg0: i32) -> (i32, i32) {
    %c0_i32 = arith.constant 0 : i32
    %c0_i32_0 = arith.constant 0 : i32
    %c0_i32_1 = arith.constant 0 : i32
    return %c0_i32, %c0_i32_0 : i32, i32
  }
  func.func @transform_4(%arg0: i32) -> (i32, i32) {
    %c0_i32 = arith.constant 0 : i32
    %c0_i32_0 = arith.constant 0 : i32
    %c0_i32_1 = arith.constant 0 : i32
    return %c0_i32, %c0_i32_0 : i32, i32
  }
  func.func @transform_5(%arg0: i32) -> (i32, i32) {
    %c0_i32 = arith.constant 0 : i32
    %c0_i32_0 = arith.constant 0 : i32
    %c0_i32_1 = arith.constant 0 : i32
    return %c0_i32, %c0_i32_0 : i32, i32
  }
  func.func @transform_6(%arg0: i32) -> (i32, i32) {
    %c0_i32 = arith.constant 0 : i32
    %c0_i32_0 = arith.constant 0 : i32
    %c0_i32_1 = arith.constant 0 : i32
    return %c0_i32, %c0_i32_0 : i32, i32
  }
  func.func @transform_7(%arg0: i32) -> (i32, i32) {
    %c0_i32 = arith.constant 0 : i32
    %c0_i32_0 = arith.constant 0 : i32
    return %arg0, %c0_i32 : i32, i32
  }
}

</mosaic_0001>

<bundles_post_ra>
// kernel: tpu_custom_call.1
= control target key start
LH: loop header
LB: loop body
LE: loop exit
PB: predicated region body
PF: predicated region fallthrough
CT: control target
= control target key end

     0   :  { %s2219_s0 = inlined_call_operand.hbm [shape: f32[20,24], index: 0, kind: input, shape index: {}]   ;;  %s2220_s1 = inlined_call_operand.hbm [shape: f32[20,48], index: 1, kind: input, shape index: {}]   ;;  %s2221_s2 = inlined_call_operand.hbm [shape: f32[20,72], index: 2, kind: input, shape index: {}]   ;;  %s2222_s3 = inlined_call_operand.hbm [shape: bf16[24,384], index: 3, kind: input, shape index: {}]   ;;  %s2223_s4 = inlined_call_operand.hbm [shape: bf16[48,384], index: 4, kind: input, shape index: {}]   ;;  %s2224_s5 = inlined_call_operand.hbm [shape: bf16[72,384], index: 5, kind: input, shape index: {}]   ;;  %s2225_s6 = inlined_call_operand.vmem [shape: f32[1,384], index: 6, kind: input, shape index: {}]   ;;  %s2226_s7 = inlined_call_operand.hbm [shape: f32[20,384], index: 7, kind: output, shape index: {}]  }
   0x1   :  { %2234 = sst [smem:[#allocation23_spill]] %s2222_s3 }
   0x2   :  { %12 = vsyncpa [#allocation3], 0 }
   0x3   :  { %14 = vsyncpa [#allocation3 + $0x1], 0 }
   0x4   :  { %15 = vsyncpa [#allocation6], 0 }
   0x5   :  { %17 = vsyncpa [#allocation6 + $0x1], 0 }
   0x6   :  { %18 = vsyncpa [#allocation9], 0 }
   0x7   :  { %19 = vsyncpa [#allocation12], 0 }
   0x8   :  { %20 = vsyncpa [#allocation4], 0 }
   0x9   :  { %22 = vsyncpa [#allocation4 + $0x1], 0  ;;  %s1778_s24 = smov 0   ;;  %s1780_s25 = smov 0  }
   0xa   :  { %s1782_s26 = smov 0   ;;  %s1784_s27 = smov 0  }
   0xb LB: > { %2235 = sst [smem:[#allocation19_spill]] %s1704_s24  ;;  %s1799_s28 = sadd.s32 4294967295, %s1716_s27   ;;  %s1716_s27 = sphi %s1784_s27, %s2260_s27   ;;  %s1712_s26 = sphi %s1782_s26, %s2264_s26   ;;  %s1708_s25 = sphi %s1780_s25, %s2263_s25   ;;  %s1704_s24 = sphi %s1778_s24, %s2262_s24  }
   0xc   : > { %s1178_s29 = sadd.s32 4294967294, %s1716_s27   ;;  %s1803_s30 = sadd.s32 1, %s1716_s27  }
   0xd   : > { %2236 = sst [smem:[#allocation20_spill]] %s1803_s30  ;;  %s35_s8 = sadd.s32 1, %s1712_s26 }
   0xe   : > { %s32_s9 = ssub.s32 %s1716_s27, %s1803_s30  ;;  %p42_p0 = scmp.ne.s32.totalorder %s1712_s26, %s1708_s25 }
   0xf   : > { %p33_p1 = scmp.eq.s32.totalorder %s32_s9, 0  ;;  %p43_p2 = scmp.eq.s32.totalorder %s1716_s27, 0 }
  0x10   : > { %p48_p3 = scmp.ne.s32.totalorder %s1708_s25, %s1704_s24  ;;  %p2227_p4 = scmp.eq.s32.totalorder %s1799_s28, 0 }
  0x11   : > { %s1815_s10 = scalar_select %p33_p1, %s1712_s26, %s35_s8  }
  0x12   : > { %p1817_p5 = por %p43_p2, %p42_p0  ;;  %p1823_p6 = por %p2227_p4, %p48_p3 }
  0x13   : > { %2237 = sst [smem:[#allocation21_spill]] %s1815_s10  ;;  %p208_p7 = scmp.eq.s32.totalorder %s1799_s28, 1 }
  0x14   : > { %s2238_s11 = scalar_select %p1817_p5, 1, 0 }
  0x15   : > { %s2239_s12 = scalar_select %p1823_p6, 1, 0 }
  0x16   : > { %p214_p8 = scmp.eq.s32.totalorder %s1178_s29, 1  ;;  %p1179_p9 = scmp.ge.s32.totalorder %s1716_s27, 1 }
  0x17   : > { %p221_p10 = scmp.lt.s32.totalorder %s1716_s27, 3  ;;  %p1830_p11 = por %p208_p7, %p42_p0 }
  0x18   : > { %p1834_p12 = por %p214_p8, %p48_p3  ;;  %s1718_s16 = smov [#allocation8]  }
  0x19   : > { %s2240_s13 = scalar_select %p1830_p11, 1, 0 }
  0x1a   : > { %s2241_s14 = scalar_select %p1834_p12, 1, 0 }
  0x1b   : > { %p1838_p13 = pnand %p1179_p9, %p221_p10  ;;  %s233_s17 = sshll.u32 %s1718_s16, 4  ;;  %s234_s17 = int_to_ptr.vmem [resolvable:$true] %s233_s17 }
  0x1c   : > { %2242 = sst [smem:[#allocation22_spill]] %s2241_s14  ;;  %s1719_s19 = smov [#allocation10]  }
  0x1d   : > { %s2243_s15 = scalar_select %p1838_p13, 1, 0 }
  0x1e   : > { %p1339_p1 = pneg %p1838_p13  ;;  %s246_s20 = sshll.u32 %s1719_s19, 4  ;;  %s1850_s20 = int_to_ptr.vmem [resolvable:$true] %s246_s20 }
  0x1f   : > { %s2245_s3 = sld [smem:[#allocation23_spill]] }
  0x20   : > { %p1846_p2 = pnand %p1339_p1, %p2227_p4 }
  0x22   : > { %p1860_p3 = pneg %p1846_p2 }
  0x25   : > { %s1470_s23 = scalar_lea.hbm %s2245_s3, 576 }
  0x26   : > { %p1471_p0 = scmp.ne.s32.totalorder %s2245_s3, %s1470_s23  ;;  %p1477_p9 = scmp.lt.u32.totalorder %s1470_s23, %s2245_s3 }
  0x28   : > { %p1473_p7 = pnand %p1860_p3, %p1471_p0 }
  0x2a   : > { %p1474_p8 = pneg %p1473_p7 }
  0x2c   : > { %p1479_p10 = pnand %p1477_p9, %p1474_p8 }
  0x2e   : > { %1482 = shalt.err (!%p1479_p10)
}
  0x2f   : > { %s1483_s21 = scalar_lea.vmem %s234_s17, 576  ;;  %p1491_p11 = scmp.lt.s32.totalorder %s234_s17, %s234_s17 }
  0x30   : > { %p1484_p1 = scmp.ne.s32.totalorder %s234_s17, %s1483_s21  ;;  %p1492_p6 = scmp.lt.s32.totalorder %s1483_s21, %s1483_s21 }
  0x32   : > { %p1486_p4 = pnand %p1484_p1, %p1860_p3  ;;  %p1493_p13 = por %p1492_p6, %p1491_p11 }
  0x34   : > { %p1487_p12 = pneg %p1486_p4 }
  0x36   : > { %p1494_p5 = pnand %p1493_p13, %p1487_p12 }
  0x38   : > { %1497 = shalt.err (!%p1494_p5)
}
  0x39   : > { %s1720_s22 = smov 192   ;;  %s1721_s29 = smov 12  }
  0x3a   : > { %1342 = dma.hbm_to_vmem [thread:$0]  (!%p1846_p2), %s2245_s3, 576, %s234_s17, [#allocation9], %s1720_s22, %s1720_s22, %s1721_s29  }
  0x3b   : > { %s1498_s10 = scalar_lea.hbm %s2223_s4, 1152 }
  0x3c   : > { %p1499_p4 = scmp.ne.s32.totalorder %s2223_s4, %s1498_s10  ;;  %p1505_p11 = scmp.lt.u32.totalorder %s1498_s10, %s2223_s4 }
  0x3e   : > { %p1501_p5 = pnand %p1499_p4, %p1860_p3 }
  0x40   : > { %p1502_p6 = pneg %p1501_p5 }
  0x42   : > { %p1507_p12 = pnand %p1505_p11, %p1502_p6 }
  0x44   : > { %1510 = shalt.err (!%p1507_p12)
}
  0x45   : > { %s1511_s17 = scalar_lea.vmem %s1850_s20, 1152  ;;  %p1519_p8 = scmp.lt.s32.totalorder %s1850_s20, %s1850_s20 }
  0x46   : > { %p1512_p13 = scmp.ne.s32.totalorder %s1850_s20, %s1511_s17  ;;  %p1520_p9 = scmp.lt.s32.totalorder %s1511_s17, %s1511_s17 }
  0x48   : > { %p1514_p0 = pnand %p1512_p13, %p1860_p3  ;;  %p1521_p10 = por %p1520_p9, %p1519_p8 }
  0x4a   : > { %p1515_p7 = pneg %p1514_p0 }
  0x4c   : > { %p1522_p1 = pnand %p1521_p10, %p1515_p7 }
  0x4e   : > { %1525 = shalt.err (!%p1522_p1)
}
  0x4f   : > { %1345 = dma.hbm_to_vmem [thread:$0]  (!%p1846_p2), %s2223_s4, 1152, %s1850_s20, [#allocation9], %s1720_s22, %s1720_s22, %s1721_s29  }
  0x50   : > { %s1722_s10 = smov [#allocation11]   ;;  %s1526_s16 = scalar_lea.hbm %s2224_s5, 1728 }
  0x51   : > { %s259_s14 = sshll.u32 %s1722_s10, 4  ;;  %p1527_p4 = scmp.ne.s32.totalorder %s2224_s5, %s1526_s16  ;;  %s260_s14 = int_to_ptr.vmem [resolvable:$true] %s259_s14 }
  0x52   : > { %p1533_p11 = scmp.lt.u32.totalorder %s1526_s16, %s2224_s5 }
  0x53   : > { %p1529_p5 = pnand %p1527_p4, %p1860_p3 }
  0x55   : > { %p1530_p6 = pneg %p1529_p5 }
  0x57   : > { %p1535_p12 = pnand %p1533_p11, %p1530_p6 }
  0x59   : > { %1538 = shalt.err (!%p1535_p12)
}
  0x5a   : > { %s1539_s20 = scalar_lea.vmem %s260_s14, 1728  ;;  %p1547_p8 = scmp.lt.s32.totalorder %s260_s14, %s260_s14 }
  0x5b   : > { %p1540_p13 = scmp.ne.s32.totalorder %s260_s14, %s1539_s20  ;;  %p1548_p9 = scmp.lt.s32.totalorder %s1539_s20, %s1539_s20 }
  0x5d   : > { %p1542_p0 = pnand %p1540_p13, %p1860_p3  ;;  %p1549_p10 = por %p1548_p9, %p1547_p8 }
  0x5f   : > { %p1543_p7 = pneg %p1542_p0 }
  0x61   : > { %p1550_p1 = pnand %p1549_p10, %p1543_p7 }
  0x63   : > { %1553 = shalt.err (!%p1550_p1)
}
  0x64   : > { %1348 = dma.hbm_to_vmem [thread:$0]  (!%p1846_p2), %s2224_s5, 1728, %s260_s14, [#allocation12], %s1720_s22, %s1720_s22, %s1721_s29  }
  0x65   : > { %p1183_p4 = scmp.ge.s32.totalorder %s1716_s27, 2 }
  0x66   : > { %p2247_p3 = scmp.ne.s32.totalorder (!%p1183_p4), %s2238_s11, 0 }
  0x67   : > { %272 = sbr.rel (%p1183_p4) target bundleno = 219 (0xdb), region = 32 }
  0x6e   : > { %275 = sbr.rel (!%p2247_p3) target bundleno = 145 (0x91), region = 36  ;;  %s276_s9 = sand.u32 (%p2247_p3), 1, %s1712_s26  }
  0x6f   : > { %s1185_s30 = sshll.u32 (%p2247_p3), %s1716_s27, 1  ;;  %s1184_s18 = sshll.u32 (%p2247_p3), %s276_s9, 4 }
  0x70   : > { %s282_s10 = ssub.s32 (%p2247_p3), 3, %s1185_s30  ;;  %s1936_s29 = scalar_lea.sflag (%p2247_p3), [#allocation3], %s276_s9 }
  0x71   : > { %p283_p5 = scmp.lt.s32.totalorder (%p2247_p3), %s282_s10, 2  ;;  %s280_s14 = scalar_lea.vmem (%p2247_p3), [#allocation2], %s1184_s18 }
  0x75   : > { %s2266_s10 = smov (!%p283_p5, %s282_s10), 2 }
  0x76   : > { %s1933_s23 = sshll.u32 %s2266_s10, 7 }
  0x77   : > { %s287_s22 = ssub.s32 256, %s1933_s23 }
  0x78   : > { %288 = vsyncadd %s1936_s29, %s287_s22  ;;  %p1187_p2 = scmp.ne.s32.totalorder %s1933_s23, 0  ;;  %s1265_s8 = sshll.u32 %s1716_s27, 8 }
  0x79   : > { %s1944_s21 = scalar_lea.hbm %s2219_s0, %s1265_s8  ;;  %s293_s17 = sshll.u32 %s280_s14, 4  ;;  %s1946_s17 = int_to_ptr.vmem [resolvable:$true] %s293_s17 }
  0x7a   : > { %s1554_s20 = scalar_lea.hbm %s1944_s21, %s1933_s23  ;;  %s1558_s9 = scalar_lea.hbm %s2219_s0, 384 }
  0x7b   : > { %p1555_p6 = scmp.ne.s32.totalorder %s1944_s21, %s1554_s20  ;;  %p1559_p13 = scmp.lt.u32.totalorder %s1944_s21, %s2219_s0 }
  0x7c   : > { %p1560_p0 = scmp.lt.u32.totalorder %s1558_s9, %s1554_s20  ;;  %p1562_p8 = scmp.lt.u32.totalorder %s1554_s20, %s1944_s21 }
  0x7d   : > { %p1556_p11 = pnand %p1555_p6, %p1187_p2 }
  0x7e   : > { %p1561_p7 = por %p1560_p0, %p1559_p13 }
  0x7f   : > { %p1557_p12 = pneg %p1556_p11 }
  0x80   : > { %p1563_p9 = por %p1562_p8, %p1561_p7 }
  0x82   : > { %p1564_p10 = pnand %p1563_p9, %p1557_p12 }
  0x84   : > { %1567 = shalt.err (!%p1564_p10)
}
  0x85   : > { %s1568_s10 = scalar_lea.vmem %s1946_s17, %s1933_s23  ;;  %s1723_s22 = smov [#allocation2]  }
  0x86   : > { %p1569_p1 = scmp.ne.s32.totalorder %s1946_s17, %s1568_s10  ;;  %s1572_s14 = sshll.u32 %s1723_s22, 4  ;;  %s1573_s14 = int_to_ptr.vmem [resolvable:$false] %s1572_s14 }
  0x87   : > { %s1574_s8 = scalar_lea.vmem %s1573_s14, 512  ;;  %p1575_p6 = scmp.lt.s32.totalorder %s1946_s17, %s1573_s14 }
  0x88   : > { %p1570_p3 = pnand %p1569_p1, %p1187_p2  ;;  %p1576_p11 = scmp.lt.s32.totalorder %s1574_s8, %s1568_s10 }
  0x8a   : > { %p1571_p5 = pneg %p1570_p3  ;;  %p1577_p13 = por %p1576_p11, %p1575_p6 }
  0x8c   : > { %p1578_p0 = pnand %p1577_p13, %p1571_p5 }
  0x8e   : > { %1581 = shalt.err (!%p1578_p0)
}
  0x8f   : > { %s1724_s16 = smov 128   ;;  %s1725_s19 = smov 8  }
  0x90   : > { %299 = dma.hbm_to_vmem [thread:$0]  (%p1187_p2), %s1944_s21, %s1933_s23, %s1946_s17, %s1936_s29, %s1724_s16, %s1724_s16, %s1725_s19  }
  0x91 PF: > { %p2248_p12 = scmp.ne.s32.totalorder %s2238_s11, 0 }
  0x92   : > { %s303_s20 = sand.u32 (%p2248_p12), 1, %s1716_s27   ;;  %s305_s3 = sand.u32 (%p2248_p12), 1, %s1712_s26  }
  0x93   : > { %302 = sbr.rel (!%p2248_p12) target bundleno = 182 (0xb6), region = 40  ;;  %s1191_s24 = sshll.u32 (%p2248_p12), %s305_s3, 4 }
  0x94   : > { %s1192_s9 = sshll.u32 (%p2248_p12), %s1716_s27, 1  ;;  %s1981_s22 = scalar_lea.sflag (%p2248_p12), [#allocation6], %s303_s20 }
  0x95   : > { %s309_s30 = ssub.s32 (%p2248_p12), 3, %s1192_s9  ;;  %s307_s23 = scalar_lea.vmem (%p2248_p12), [#allocation5], %s1191_s24 }
  0x96   : > { %p310_p7 = scmp.lt.s32.totalorder (%p2248_p12), %s309_s30, 2 }
  0x9a   : > { %s2268_s30 = smov (!%p310_p7, %s309_s30), 2 }
  0x9b   : > { %s1978_s18 = sshll.u32 %s2268_s30, 7 }
  0x9c   : > { %s314_s10 = ssub.s32 256, %s1978_s18 }
  0x9d   : > { %315 = vsyncadd %s1981_s22, %s314_s10  ;;  %p1194_p2 = scmp.ne.s32.totalorder %s1978_s18, 0  ;;  %s1266_s29 = sshll.u32 %s1716_s27, 8 }
  0x9e   : > { %s1989_s14 = scalar_lea.hbm %s2220_s1, %s1266_s29  ;;  %s320_s8 = sshll.u32 %s307_s23, 4  ;;  %s1991_s8 = int_to_ptr.vmem [resolvable:$true] %s320_s8 }
  0x9f   : > { %s1582_s16 = scalar_lea.hbm %s1989_s14, %s1978_s18  ;;  %s1586_s3 = scalar_lea.hbm %s2220_s1, 384 }
  0xa0   : > { %p1583_p8 = scmp.ne.s32.totalorder %s1989_s14, %s1582_s16  ;;  %p1587_p1 = scmp.lt.u32.totalorder %s1989_s14, %s2220_s1 }
  0xa1   : > { %p1588_p3 = scmp.lt.u32.totalorder %s1586_s3, %s1582_s16  ;;  %p1590_p6 = scmp.lt.u32.totalorder %s1582_s16, %s1989_s14 }
  0xa2   : > { %p1584_p9 = pnand %p1583_p8, %p1194_p2 }
  0xa3   : > { %p1589_p5 = por %p1588_p3, %p1587_p1 }
  0xa4   : > { %p1585_p10 = pneg %p1584_p9 }
  0xa5   : > { %p1591_p11 = por %p1590_p6, %p1589_p5 }
  0xa7   : > { %p1592_p13 = pnand %p1591_p11, %p1585_p10 }
  0xa9   : > { %1595 = shalt.err (!%p1592_p13)
}
  0xaa   : > { %s1596_s30 = scalar_lea.vmem %s1991_s8, %s1978_s18  ;;  %s1726_s10 = smov [#allocation5]  }
  0xab   : > { %p1597_p0 = scmp.ne.s32.totalorder %s1991_s8, %s1596_s30  ;;  %s1600_s23 = sshll.u32 %s1726_s10, 4  ;;  %s1601_s23 = int_to_ptr.vmem [resolvable:$false] %s1600_s23 }
  0xac   : > { %s1602_s29 = scalar_lea.vmem %s1601_s23, 512  ;;  %p1603_p8 = scmp.lt.s32.totalorder %s1991_s8, %s1601_s23 }
  0xad   : > { %p1598_p12 = pnand %p1597_p0, %p1194_p2  ;;  %p1604_p9 = scmp.lt.s32.totalorder %s1602_s29, %s1596_s30 }
  0xaf   : > { %p1599_p7 = pneg %p1598_p12  ;;  %p1605_p1 = por %p1604_p9, %p1603_p8 }
  0xb1   : > { %p1606_p3 = pnand %p1605_p1, %p1599_p7 }
  0xb3   : > { %1609 = shalt.err (!%p1606_p3)
}
  0xb4   : > { %s1727_s21 = smov 128   ;;  %s1728_s17 = smov 8  }
  0xb5   : > { %326 = dma.hbm_to_vmem [thread:$0]  (%p1194_p2), %s1989_s14, %s1978_s18, %s1991_s8, %s1981_s22, %s1727_s21, %s1727_s21, %s1728_s17  }
  0xb6 PF: > { %p2249_p10 = scmp.ne.s32.totalorder %s2238_s11, 0 }
  0xb7   : > { %s330_s16 = sand.u32 (%p2249_p10), 1, %s1716_s27   ;;  %s332_s19 = sand.u32 (%p2249_p10), 1, %s1712_s26  }
  0xb8   : > { %329 = sbr.rel (!%p2249_p10) target bundleno = 219 (0xdb), region = 44  ;;  %s1198_s20 = sshll.u32 (%p2249_p10), %s332_s19, 4 }
  0xb9   : > { %s1199_s3 = sshll.u32 (%p2249_p10), %s1716_s27, 1  ;;  %s2026_s10 = scalar_lea.sflag (%p2249_p10), [#allocation6], %s330_s16 }
  0xba   : > { %s336_s24 = ssub.s32 (%p2249_p10), 3, %s1199_s3  ;;  %s334_s18 = scalar_lea.vmem (%p2249_p10), [#allocation7], %s1198_s20 }
  0xbb   : > { %p337_p5 = scmp.lt.s32.totalorder (%p2249_p10), %s336_s24, 2 }
  0xbf   : > { %s2270_s24 = smov (!%p337_p5, %s336_s24), 2 }
  0xc0   : > { %s2023_s9 = sshll.u32 %s2270_s24, 7 }
  0xc1   : > { %s341_s30 = ssub.s32 256, %s2023_s9 }
  0xc2   : > { %342 = vsyncadd %s2026_s10, %s341_s30  ;;  %p1201_p2 = scmp.ne.s32.totalorder %s2023_s9, 0  ;;  %s1267_s11 = sshll.u32 %s1716_s27, 8 }
  0xc3   : > { %s2034_s8 = scalar_lea.hbm %s2221_s2, %s1267_s11  ;;  %s347_s23 = sshll.u32 %s334_s18, 4  ;;  %s2036_s23 = int_to_ptr.vmem [resolvable:$true] %s347_s23 }
  0xc4   : > { %s1610_s29 = scalar_lea.hbm %s2034_s8, %s2023_s9  ;;  %s1614_s16 = scalar_lea.hbm %s2221_s2, 384 }
  0xc5   : > { %p1611_p6 = scmp.ne.s32.totalorder %s2034_s8, %s1610_s29  ;;  %p1615_p0 = scmp.lt.u32.totalorder %s2034_s8, %s2221_s2 }
  0xc6   : > { %p1616_p12 = scmp.lt.u32.totalorder %s1614_s16, %s1610_s29  ;;  %p1618_p8 = scmp.lt.u32.totalorder %s1610_s29, %s2034_s8 }
  0xc7   : > { %p1612_p11 = pnand %p1611_p6, %p1201_p2 }
  0xc8   : > { %p1617_p7 = por %p1616_p12, %p1615_p0 }
  0xc9   : > { %p1613_p13 = pneg %p1612_p11 }
  0xca   : > { %p1619_p9 = por %p1618_p8, %p1617_p7 }
  0xcc   : > { %p1620_p1 = pnand %p1619_p9, %p1613_p13 }
  0xce   : > { %1623 = shalt.err (!%p1620_p1)
}
  0xcf   : > { %s1624_s3 = scalar_lea.vmem %s2036_s23, %s2023_s9  ;;  %s1729_s24 = smov [#allocation7]  }
  0xd0   : > { %p1625_p3 = scmp.ne.s32.totalorder %s2036_s23, %s1624_s3  ;;  %s1628_s30 = sshll.u32 %s1729_s24, 4  ;;  %s1629_s30 = int_to_ptr.vmem [resolvable:$false] %s1628_s30 }
  0xd1   : > { %s1630_s18 = scalar_lea.vmem %s1629_s30, 512  ;;  %p1631_p6 = scmp.lt.s32.totalorder %s2036_s23, %s1629_s30 }
  0xd2   : > { %p1626_p10 = pnand %p1625_p3, %p1201_p2  ;;  %p1632_p11 = scmp.lt.s32.totalorder %s1630_s18, %s1624_s3 }
  0xd4   : > { %p1627_p5 = pneg %p1626_p10  ;;  %p1633_p0 = por %p1632_p11, %p1631_p6 }
  0xd6   : > { %p1634_p12 = pnand %p1633_p0, %p1627_p5 }
  0xd8   : > { %1637 = shalt.err (!%p1634_p12)
}
  0xd9   : > { %s1730_s11 = smov 128   ;;  %s1731_s22 = smov 8  }
  0xda   : > { %353 = dma.hbm_to_vmem [thread:$0]  (%p1201_p2), %s2034_s8, %s2023_s9, %s2036_s23, %s2026_s10, %s1730_s11, %s1730_s11, %s1731_s22  }
  0xdb PF: > { %p2250_p13 = scmp.ne.s32.totalorder %s2243_s15, 0 }
  0xdc   : > { %s2066_s14 = sand.u32 (!%p2250_p13), 1, %s1708_s25   ;;  %p2251_p7 = scmp.ne.s32.totalorder (!%p2250_p13), %s2239_s12, 0 }
  0xdd   : > { %359 = sbr.rel (%p2250_p13) target bundleno = 560 (0x230), region = 48  ;;  %s2069_s29 = sshll.u32 (!%p2250_p13), %s2066_s14, 4 }
  0xde   : > { %s362_s21 = scalar_lea.sflag (!%p2250_p13), [#allocation3], %s2066_s14  ;;  %s365_s17 = scalar_lea.vmem (!%p2250_p13), [#allocation2], %s2069_s29 }
  0xe4   : > { %1683 = dma.done.wait (%p2251_p7), %s362_s21, 256  }
  0xe5   : > { %1685 = vsyncadd (%p2251_p7), %s362_s21, 4294967040  ;;  %s370_s15 = sand.u32 1, %s1799_s28   ;;  %s374_s10 = scalar_lea.vmem [#allocation5], %s2069_s29 }
  0xe6   : > { %s371_s9 = scalar_lea.sflag [#allocation6], %s370_s15 }
  0xe7   : > { %1687 = dma.done.wait (%p2251_p7), %s371_s9, 512  }
  0xe8   : > { %1689 = vsyncadd (%p2251_p7), %s371_s9, 4294966784  ;;  %s383_s8 = scalar_lea.vmem [#allocation7], %s2069_s29  ;;  %p2252_p2 = scmp.eq.s32.totalorder %s1799_s28, 0 }
  0xea   : > { %1691 = dma.done.wait (%p2252_p2), [#allocation9], 1728   ;;  %p2253_p8 = pmov %p2252_p2 }
  0xeb   : > { %p2254_p9 = pmov %p2252_p2 }
  0xec   : > { %1693 = vsyncadd (%p2253_p8), [#allocation9], 4294965568 }
  0xed   : > { %1695 = dma.done.wait (%p2254_p9), [#allocation12], 1728   ;;  %p2255_p1 = pmov %p2252_p2 }
  0xee   : > { %v1732_v0 = vmov 0.0   ;;  %vm1733_vm0 = vmmov 0   ;;  %v1734_v1 = vmov 0   ;;  %v1408_v2 = vld [vmem:[#allocation10 + $0x4] ss:$12 sps:$4 sm:$0xff]   ;;  %vm532_vm1 = vcmask 392192  }
  0xef   : > { %1697 = vsyncadd (%p2255_p1), [#allocation12], 4294965568  ;;  %1281 = vmatprep.subr.bf16.mxu1 %v1732_v0  ;;  %1287 = vmatprep.mubr.msk.bf16.mxu1 %vm1733_vm0, %v1732_v0  ;;  %v1410_v3 = vld [vmem:[#allocation10 + $0x8] ss:$12 sps:$4 sm:$0xff]   ;;  %v1411_v4 = vld [vmem:[#allocation10] ss:$12 sps:$4 sm:$0xff]   ;;  %v942_v61 = vlaneseq }
  0xf0   : > { %568 = vmatprep.mubr.bf16.mxu0 %v1734_v1  ;;  %536 = vmatprep.subr.bf16.mxu0 %v1408_v2  ;;  %v1412_v5 = vld [vmem:[#allocation10 + $0x1c] ss:$12 sps:$4 sm:$0xff]   ;;  %v1414_v6 = vld [vmem:[#allocation10 + $0x20] ss:$12 sps:$4 sm:$0xff]   ;;  %v1415_v7 = vld [vmem:[#allocation10 + $0x18] ss:$12 sps:$4 sm:$0xff]  }
  0xf1   : > { %1282 = vmatpush3.bf16.msra.mxu1 %v1410_v3  ;;  %537 = vmatpush1.bf16.msra.mxu0 %v1411_v4  ;;  %v1416_v8 = vld [vmem:[#allocation10 + $0x34] ss:$12 sps:$4 sm:$0xff]   ;;  %v1418_v9 = vld [vmem:[#allocation10 + $0x38] ss:$12 sps:$4 sm:$0xff]   ;;  %v1419_v12 = vld [vmem:[#allocation10 + $0x30] ss:$12 sps:$4 sm:$0xff]  }
  0xf2   : > { %1283 = vmatprep.subr.bf16.mxu1 %v1732_v0  ;;  %538 = vmatprep.subr.bf16.mxu0 %v1412_v5  ;;  %v2097_v10 = vld [vmem:[%s374_s10] sm:$0xff]  ;;  %v2099_v11 = vld [vmem:[%s374_s10 + $0x8] sm:$0xff]  ;;  %vm648_vm2 = vcmask 1043456   ;;  %vm644_vm3 = vcmask 195584   ;;  %vm837_vm4 = vcmask 588800   ;;  %v943_v62 = vshrl.u32 %v942_v61, 7 }
  0xf3   : > { %v469_v13 = vmul.f32 %v2097_v10, %v2097_v10  ;;  %v470_v14 = vmul.f32 %v2099_v11, %v2099_v11  ;;  %v1422_v15 = vld [vmem:[#allocation8 + $0x4] ss:$12 sps:$4 sm:$0xff]   ;;  %v465_v17 = vld [vmem:[#allocation8 + $0x18] sm:$0xff]  ;;  %v1420_v18 = vld [vmem:[#allocation8] ss:$12 sps:$4 sm:$0xff]   ;;  %s1321_s16 = smul.u32 48, %s2066_s14 }
  0xf4   : > { %v1423_v19 = vld [vmem:[#allocation8 + $0x8] ss:$12 sps:$4 sm:$0xff]   ;;  %v1424_v20 = vld [vmem:[#allocation8 + $0x20] ss:$0 sps:$4 sm:$0xff]   ;;  %v1227_v21 = vcombine.high %v465_v17, %v465_v17  ;;  %v1226_v22 = vcombine.low %v465_v17, %v465_v17  ;;  %v1430_v27 = vld [vmem:[#allocation11 + $0x4] ss:$12 sps:$4 sm:$0xff]  }
  0xf5   : > { %1284 = vmatpush3.bf16.msra.mxu1 %v1414_v6  ;;  %539 = vmatpush1.bf16.msra.mxu0 %v1415_v7  ;;  %v471_v16 = vpack.c.bf16 %v470_v14, %v469_v13  ;;  %v458_v23 = vld [vmem:[%s365_s17] sm:$0xff]  ;;  %v459_v24 = vld [vmem:[%s365_s17 + $0x8] sm:$0xff]  ;;  %v656_v25 = vsel %vm648_vm2, %v1424_v20, 0  ;;  %v952_v63 = vsub.s32 2, %v943_v62  ;;  %v948_v3 = vsub.s32 1, %v943_v62  ;;  %s435_s19 = scalar_lea.vmem [#allocation13], %s1321_s16 }
  0xf6   : > { %1285 = vmatprep.subr.bf16.mxu1 %v1732_v0  ;;  %540 = vmatprep.subr.bf16.mxu0 %v1416_v8  ;;  %v650_v26 = vsel %vm648_vm2, %v1226_v22, 0  ;;  %v460_v28 = vpack.c.bf16 %v459_v24, %v458_v23  ;;  %v1427_v29 = vld [vmem:[#allocation11 + $0x8] ss:$12 sps:$4 sm:$0xff]   ;;  %v1431_v30 = vld [vmem:[#allocation11 + $0x20] ss:$12 sps:$4 sm:$0xff]   ;;  %s1012_s20 = scalar_lea.sflag [#allocation4], %s2066_s14 }
  0xf7   : > { %v1428_v31 = vld [vmem:[#allocation11] ss:$12 sps:$4 sm:$0xff]   ;;  %v1434_v32 = vld [vmem:[#allocation11 + $0x1c] ss:$12 sps:$4 sm:$0xff]   ;;  %v1435_v33 = vld [vmem:[#allocation11 + $0x38] ss:$12 sps:$4 sm:$0xff]  }
  0xf8   : > { %v1432_v34 = vld [vmem:[#allocation11 + $0x18] ss:$12 sps:$4 sm:$0xff]   ;;  %v1438_v35 = vld [vmem:[#allocation11 + $0x34] ss:$12 sps:$4 sm:$0xff]   ;;  %v1439_v36 = vld [vmem:[#allocation11 + $0x50] ss:$12 sps:$4 sm:$0xff]  }
  0xf9   : > { %1286 = vmatpush3.bf16.msra.mxu1 %v1418_v9  ;;  %541 = vmatpush1.bf16.msra.mxu0 %v1419_v12  ;;  %v2128_v37 = vld [vmem:[%s383_s8] sm:$0xff]  ;;  %v2132_v38 = vld [vmem:[%s383_s8 + $0x8] sm:$0xff]  ;;  %p2256_p3 = scmp.ne.s32.totalorder %s2240_s13, 0 }
  0xfa   : > { %1291 = vmatprep.subr.bf16.mxu1 %v1732_v0  ;;  %658 = vmatprep.subr.bf16.mxu0 %v1422_v15  ;;  %v1436_v39 = vld [vmem:[#allocation11 + $0x30] ss:$12 sps:$4 sm:$0xff]   ;;  %v1443_v40 = vld [vmem:[#allocation11 + $0x68] ss:$0 sps:$4 sm:$0xff]   ;;  %v1442_v41 = vld [vmem:[#allocation11 + $0x4c] ss:$12 sps:$4 sm:$0xff]   ;;  %v744_v43 = vmul.f32 %v2128_v37, %v2128_v37  ;;  %v745_v44 = vmul.f32 %v2132_v38, %v2132_v38 }
  0xfb   : > { %v763_v42 = vld [vmem:[#allocation11 + $0x60] sm:$0xff]  ;;  %v1440_v45 = vld [vmem:[#allocation11 + $0x48] ss:$12 sps:$4 sm:$0xff]   ;;  %v848_v46 = vsel %vm648_vm2, %v1443_v40, 0  ;;  %s1256_s3 = sshll.u32 (%p2256_p3), %s1799_s28, 1 }
  0xfc   : > { %1288 = vmatmul.mubr.msk.bf16.vlgmr.msra.gmra.mrb[0].mxu1 %vm532_vm1, %v471_v16  ;;  %1221 = vmatmul.mubr.msk.bf16.vlgmr.msra.gmra.mrb[0].mxu0 %vm532_vm1, %v471_v16  ;;  %v1245_v47 = vcombine.high %v763_v42, %v763_v42  ;;  %v1244_v48 = vcombine.low %v763_v42, %v763_v42  ;;  %v746_v49 = vpack.c.bf16 %v745_v44, %v744_v43  ;;  %s1020_s24 = ssub.s32 (%p2256_p3), 3, %s1256_s3 }
  0xfd   : > { %1292 = vmatpush3.bf16.msra.mxu1 %v1423_v19  ;;  %659 = vmatpush1.bf16.msra.mxu0 %v1420_v18  ;;  %p1021_p10 = scmp.lt.s32.totalorder (%p2256_p3), %s1020_s24, 2 }
  0xfe   : > { %1293 = vmatprep.subr.bf16.mxu1 %v1732_v0  ;;  %1229 = vmatprep.subr.msk.bf16.mxu0 %vm648_vm2, %v1227_v21  ;;  %v842_v50 = vsel %vm648_vm2, %v1244_v48, 0 }
  0xff   : > { %1295 = vmatprep.mubr.msk.bf16.mxu1 %vm1733_vm0, %v1732_v0  ;;  %690 = vmatprep.mubr.bf16.mxu0 %v1734_v1 }
 0x101   : > { %1294 = vmatpush3.bf16.msra.mxu1 %v656_v25  ;;  %661 = vmatpush1.bf16.msra.mxu0 %v650_v26 }
 0x102   : > { %1299 = vmatprep.subr.bf16.mxu1 %v1732_v0  ;;  %850 = vmatprep.subr.bf16.mxu0 %v1430_v27 }
 0x104   : > { %1296 = vmatmul.mubr.msk.bf16.vlgmr.msra.gmra.mrb[4].mxu1 %vm644_vm3, %v460_v28 }
 0x105   : > { %1300 = vmatpush3.bf16.msra.mxu1 %v1427_v29  ;;  %1309 = vmatprep.mubr.msk.bf16.mxu1 %vm1733_vm0, %v1732_v0 }
 0x106   : > { %1301 = vmatprep.subr.bf16.mxu1 %v1732_v0 }
 0x108   : > { %1230 = vmatmul.mubr.msk.bf16.vlgmr.msra.gmra.mrb[0].mxu0 %vm644_vm3, %v460_v28 }
 0x109   : > { %1302 = vmatpush3.bf16.msra.mxu1 %v1431_v30  ;;  %851 = vmatpush1.bf16.msra.mxu0 %v1428_v31 }
 0x10a   : > { %1303 = vmatprep.subr.bf16.mxu1 %v1732_v0  ;;  %852 = vmatprep.subr.bf16.mxu0 %v1434_v32 }
 0x10b   : > { %882 = vmatprep.mubr.bf16.mxu0 %v1734_v1  ;;  %v944_v1 = vsub.s32 0, %v943_v62 }
 0x10d   : > { %1304 = vmatpush3.bf16.msra.mxu1 %v1435_v33  ;;  %853 = vmatpush1.bf16.msra.mxu0 %v1432_v34 }
 0x10e   : > { %1305 = vmatprep.subr.bf16.mxu1 %v1732_v0  ;;  %854 = vmatprep.subr.bf16.mxu0 %v1438_v35 }
 0x111   : > { %1306 = vmatpush3.bf16.msra.mxu1 %v1439_v36  ;;  %855 = vmatpush1.bf16.msra.mxu0 %v1436_v39 }
 0x112   : > { %1307 = vmatprep.subr.bf16.mxu1 %v1732_v0  ;;  %856 = vmatprep.subr.bf16.mxu0 %v1442_v41  ;;  %v940_v0 = vld [vmem:[%s2225_s6] sm:$0x7] }
 0x113   : > { %v953_v2 = vrot.slane %v940_v0, %v952_v63  ;;  %v945_v8 = vrot.slane %v940_v0, %v944_v1  ;;  %v949_v14 = vrot.slane %v940_v0, %v948_v3 }
 0x115   : > { %1308 = vmatpush3.bf16.msra.mxu1 %v848_v46  ;;  %857 = vmatpush1.bf16.msra.mxu0 %v1440_v45 }
 0x116   : > { %1247 = vmatprep.subr.msk.bf16.mxu0 %vm648_vm2, %v1245_v47 }
 0x118   : > { %1310 = vmatmul.mubr.msk.bf16.vlgmr.msra.gmra.mrb[8].mxu1 %vm837_vm4, %v746_v49 }
 0x119   : > { %859 = vmatpush1.bf16.msra.mxu0 %v842_v50 }
 0x11c   : > { %1248 = vmatmul.mubr.msk.bf16.vlgmr.msra.gmra.mrb[0].mxu0 %vm837_vm4, %v746_v49 }
 0x1cf   : > { %v613_v51 = vpop.f32.mrb[0].mxu1 }
 0x1d0   : > { %v1289_v52 = vpop.f32.mrb[1].mxu1 }
 0x1d1   : > { %v616_v53 = vpop.f32.mrb[2].mxu1 }
 0x1d2   : > { %v1290_v54 = vpop.f32.mrb[3].mxu1 }
 0x1d7   : > { %v735_v55 = vpop.f32.mrb[4].mxu1 }
 0x1d8   : > { %v736_v56 = vadd.f32 %v735_v55, %v613_v51  ;;  %v1297_v57 = vpop.f32.mrb[5].mxu1 }
 0x1d9   : > { %v738_v58 = vpop.f32.mrb[6].mxu1 }
 0x1da   : > { %v739_v59 = vadd.f32 %v738_v58, %v616_v53  ;;  %v1298_v60 = vpop.f32.mrb[7].mxu1 }
 0x1eb   : > { %v927_v4 = vpop.f32.mrb[8].mxu1 }
 0x1ec   : > { %v936_v5 = vadd.f32 %v927_v4, %v736_v56  ;;  %v1311_v6 = vpop.f32.mrb[9].mxu1 }
 0x1ed   : > { %v930_v7 = vpop.f32.mrb[10].mxu1 }
 0x1ee   : > { %v959_v9 = vadd.f32 %v953_v2, %v936_v5  ;;  %v939_v12 = vadd.f32 %v930_v7, %v739_v59  ;;  %v1312_v13 = vpop.f32.mrb[11].mxu1 }
 0x1ef   : > { %v884_v17 = vpop.f32.mrb[0].mxu0 }
 0x1f0   : > { %v1252_v15 = vmul.f32 -1.442695, %v959_v9  ;;  %v962_v16 = vadd.f32 %v953_v2, %v939_v12  ;;  %v957_v18 = vadd.f32 %v945_v8, %v884_v17  ;;  %v886_v19 = vpop.f32.mrb[1].mxu0 }
 0x1f1   : > { %v958_v21 = vadd.f32 %v949_v14, %v886_v19  ;;  %v888_v22 = vpop.f32.mrb[2].mxu0 }
 0x1f2   : > { %1446 = vpow2.f32 %v1252_v15  ;;  %v1255_v20 = vmul.f32 -1.442695, %v962_v16  ;;  %v1250_v23 = vmul.f32 -1.442695, %v957_v18  ;;  %v960_v24 = vadd.f32 %v945_v8, %v888_v22  ;;  %v890_v25 = vpop.f32.mrb[3].mxu0 }
 0x1f3   : > { %v1251_v26 = vmul.f32 -1.442695, %v958_v21  ;;  %v961_v27 = vadd.f32 %v949_v14, %v890_v25 }
 0x1f4   : > { %1448 = vpow2.f32 %v1255_v20  ;;  %v1253_v28 = vmul.f32 -1.442695, %v960_v24 }
 0x1f5   : > { %1450 = vpow2.f32 %v1250_v23  ;;  %v1254_v29 = vmul.f32 -1.442695, %v961_v27 }
 0x1f6   : > { %1452 = vpow2.f32 %v1251_v26 }
 0x1f7   : > { %1454 = vpow2.f32 %v1253_v28 }
 0x1f8   : > { %1456 = vpow2.f32 %v1254_v29 }
 0x1fc   : > { %v1447_v30 = vpop.eup %1446 }
 0x1fd   : > { %v983_v31 = vadd.f32 1.0, %v1447_v30 }
 0x1fe   : > { %v1449_v32 = vpop.eup %1448 }
 0x1ff   : > { %v1451_v33 = vpop.eup %1450  ;;  %1458 = vrcp.f32 %v983_v31  ;;  %v986_v34 = vadd.f32 1.0, %v1449_v32 }
 0x200   : > { %v1453_v35 = vpop.eup %1452  ;;  %v981_v36 = vadd.f32 1.0, %v1451_v33 }
 0x201   : > { %v1455_v39 = vpop.eup %1454  ;;  %1460 = vrcp.f32 %v986_v34  ;;  %v982_v40 = vadd.f32 1.0, %v1453_v35 }
 0x202   : > { %v1457_v41 = vpop.eup %1456  ;;  %1462 = vrcp.f32 %v981_v36  ;;  %v984_v42 = vadd.f32 1.0, %v1455_v39 }
 0x203   : > { %1464 = vrcp.f32 %v982_v40  ;;  %v985_v43 = vadd.f32 1.0, %v1457_v41 }
 0x204   : > { %1466 = vrcp.f32 %v984_v42 }
 0x205   : > { %1468 = vrcp.f32 %v985_v43 }
 0x209   : > { %v1459_v44 = vpop.eup %1458 }
 0x20a   : > { %v1007_v45 = vmul.f32 %v1459_v44, %v2128_v37 }
 0x20b   : > { %v1461_v46 = vpop.eup %1460 }
 0x20c   : > { %v1463_v47 = vpop.eup %1462  ;;  %v1008_v48 = vmul.f32 %v1461_v46, %v2132_v38  ;;  %1009 = vst.msk [vmem:[%s435_s19 + $0x10] sm:$0xff] %vm837_vm4, %v1007_v45  ;;  %1018 = sbr.rel (!%p2256_p3) target bundleno = 560 (0x230), region = 76 }
 0x20d   : > { %v1465_v49 = vpop.eup %1464  ;;  %v999_v50 = vmul.f32 %v1463_v47, %v957_v18 }
 0x20e   : > { %v1467_v51 = vpop.eup %1466  ;;  %1010 = vst.msk [vmem:[%s435_s19 + $0x28] sm:$0xff] %vm837_vm4, %v1008_v48  ;;  %v1003_v52 = vmul.f32 %v1465_v49, %v2097_v10 }
 0x20f   : > { %v1469_v53 = vpop.eup %1468  ;;  %1001 = vst [vmem:[%s435_s19] sm:$0xff] %v999_v50  ;;  %v1000_v54 = vmul.f32 %v1467_v51, %v960_v24 }
 0x210   : > { %1005 = vst.msk [vmem:[%s435_s19 + $0x8] sm:$0xff] %vm532_vm1, %v1003_v52  ;;  %v1004_v37 = vmul.f32 %v1469_v53, %v2099_v11 }
 0x211   : > { %1002 = vst [vmem:[%s435_s19 + $0x18] sm:$0xff] %v1000_v54 }
 0x212   : > { %1006 = vst.msk [vmem:[%s435_s19 + $0x20] sm:$0xff] %vm532_vm1, %v1004_v37 }
 0x213   : > { %s2272_s24 = smov (!%p1021_p10, %s1020_s24), 2 }
 0x214   : > { %s2161_s30 = smul.u32 384, %s2272_s24 }
 0x216   : > { %s1026_s18 = ssub.s32 768, %s2161_s30 }
 0x217   : > { %1027 = vsyncadd %s1012_s20, %s1026_s18  ;;  %p1259_p5 = scmp.ne.s32.totalorder %s2161_s30, 0  ;;  %s1322_s11 = smul.u32 768, %s1799_s28 }
 0x218   : > { %s1033_s13 = sshll.u32 %s435_s19, 4  ;;  %s1735_s15 = smov [#allocation13]   ;;  %s2173_s13 = int_to_ptr.vmem [resolvable:$true] %s1033_s13 }
 0x219   : > { %s2171_s21 = scalar_lea.hbm %s2226_s7, %s1322_s11  ;;  %s1638_s17 = scalar_lea.vmem %s2173_s13, %s2161_s30 }
 0x21a   : > { %p1639_p6 = scmp.ne.s32.totalorder %s2173_s13, %s1638_s17  ;;  %s1642_s9 = sshll.u32 %s1735_s15, 4  ;;  %s1643_s9 = int_to_ptr.vmem [resolvable:$false] %s1642_s9 }
 0x21b   : > { %s1644_s28 = scalar_lea.vmem %s1643_s9, 1536  ;;  %p1645_p12 = scmp.lt.s32.totalorder %s2173_s13, %s1643_s9 }
 0x21c   : > { %p1640_p11 = pnand %p1639_p6, %p1259_p5  ;;  %p1646_p13 = scmp.lt.s32.totalorder %s1644_s28, %s1638_s17 }
 0x21e   : > { %p1641_p0 = pneg %p1640_p11  ;;  %p1647_p7 = por %p1646_p13, %p1645_p12 }
 0x220   : > { %p1648_p2 = pnand %p1647_p7, %p1641_p0 }
 0x222   : > { %1651 = shalt.err (!%p1648_p2)
}
 0x223   : > { %s1652_s10 = scalar_lea.hbm %s2171_s21, %s2161_s30  ;;  %s1656_s23 = scalar_lea.hbm %s2226_s7, 1152 }
 0x224   : > { %p1653_p8 = scmp.ne.s32.totalorder %s2171_s21, %s1652_s10  ;;  %p1657_p3 = scmp.lt.u32.totalorder %s2171_s21, %s2226_s7 }
 0x225   : > { %p1658_p10 = scmp.lt.u32.totalorder %s1656_s23, %s1652_s10  ;;  %p1660_p11 = scmp.lt.u32.totalorder %s1652_s10, %s2171_s21 }
 0x226   : > { %p1654_p9 = pnand %p1653_p8, %p1259_p5 }
 0x227   : > { %p1659_p6 = por %p1658_p10, %p1657_p3 }
 0x228   : > { %p1655_p1 = pneg %p1654_p9 }
 0x229   : > { %p1661_p0 = por %p1660_p11, %p1659_p6 }
 0x22b   : > { %p1662_p12 = pnand %p1661_p0, %p1655_p1 }
 0x22d   : > { %1665 = shalt.err (!%p1662_p12)
}
 0x22e   : > { %s1736_s3 = smov 384   ;;  %s1737_s24 = smov 24  }
 0x22f   : > { %1039 = dma.vmem_to_hbm [thread:$0]  (%p1259_p5), %s2173_s13, %s2161_s30, %s2171_s21, %s1012_s20, %s1736_s3, %s1736_s3, %s1737_s24  }
 0x230 PF: > { %s2257_s18 = sld [smem:[#allocation19_spill]]  ;;  %s2258_s11 = sld [smem:[#allocation22_spill]] }
 0x236   : > { %s1048_s22 = sand.u32 1, %s2257_s18   ;;  %p2259_p13 = scmp.ne.s32.totalorder %s2258_s11, 0 }
 0x237   : > { %s1049_s29 = scalar_lea.sflag [#allocation4], %s1048_s22 }
 0x238   : > { %p1350_p7 = pnand %p1183_p4, %p2259_p13 }
 0x23a   : > { %1699 = dma.done.wait (!%p1350_p7), %s1049_s29, 768  }
 0x23b   : > { %1701 = vsyncadd (!%p1350_p7), %s1049_s29, 4294966528  ;;  %s2260_s27 = sld [smem:[#allocation20_spill]]  ;;  %s2261_s17 = sld [smem:[#allocation21_spill]] }
 0x23c   : > { %s2262_s24 = smov %s1708_s25  ;;  %s2263_s25 = smov %s1712_s26 }
 0x241   : > { %p25_p2 = scmp.ge.s32.totalorder %s2260_s27, 4   ;;  %s2264_s26 = smov %s2261_s17 }
 0x243   :  { %27 = sbr.rel (!%p25_p2) target bundleno = 11 (0xb), region = 129 }
 0x24a   :  { %1054 = vsyncpa [#allocation3], 1 }
 0x24b   :  { %1056 = vsyncpa [#allocation3 + $0x1], 1 }
 0x24c   :  { %1057 = vsyncpa [#allocation6], 1 }
 0x24d   :  { %1059 = vsyncpa [#allocation6 + $0x1], 1 }
 0x24e   :  { %1060 = vsyncpa [#allocation9], 1 }
 0x24f   :  { %1061 = vsyncpa [#allocation12], 1 }
 0x250   :  { %1062 = vsyncpa [#allocation4], 1 }
 0x251   :  { %1064 = vsyncpa [#allocation4 + $0x1], 1 }

</bundles_post_ra>
